<compile_context>
chip_gen: v6e
topology: v6e:2x2x1
jax: 0.10.0
libtpu: 0.0.40
codegen_flags: <defaults>
</compile_context>

<pallas_src>
import jax
import jax.numpy as jnp
from jax import lax
from jax.experimental import pallas as pl
from jax.experimental.pallas import tpu as pltpu

LANE = 128                 # TPU lane width
C_PAD = 128                # lane-dense padded class count
TQ = 128                   # query row tile
SUP_ROW_PAD = 16           # bf16 sublane tile for support rows
W_RESIDENT_BYTES = 8 << 20 # keep W resident in VMEM below this size


def _round_up(x, m):
    return ((x + m - 1) // m) * m


def _pick_k_tile(p_pad):
    # v7x-safe K tiles (cap at 512 to keep double-buffered tiles in 64 MiB)
    for cand in (512, 256, 128):
        if p_pad % cand == 0:
            return cand
    return p_pad


def _vmem_limit(est_bytes):
    # raise above v5e's 16 MiB scoped default, stay under v7x's 64 MiB physical
    return int(min(48 << 20, max(32 << 20, est_bytes + (8 << 20))))


# --------------------------------------------------------------------------
# Fused query kernel: backbone (K-reduction) + L2 head (+softmax) + cosine head
# --------------------------------------------------------------------------
def _make_forward_kernel(n_classes, use_softmax, w_full, tk):
    def kernel(x_ref, w_ref, b_ref, proto_ref, psq_ref, pn_ref,
               l2_ref, cos_ref, acc_ref):
        k = pl.program_id(1)

        @pl.when(k == 0)
        def _():
            acc_ref[...] = jnp.zeros_like(acc_ref)

        if w_full:
            # W is VMEM-resident (DMA'd once); slice the current K tile.
            off = pl.multiple_of(k * tk, 128)
            w_blk = w_ref[pl.ds(off, tk), :]
        else:
            w_blk = w_ref[...]

        # backbone partial matmul: bf16 inputs on the MXU, f32 accumulation
        acc_ref[...] += lax.dot_general(
            x_ref[...], w_blk,
            dimension_numbers=(((1,), (0,)), ((), ())),
            preferred_element_type=jnp.float32)

        @pl.when(k == pl.num_programs(1) - 1)
        def _():
            feats = acc_ref[...] + b_ref[...]                      # [TQ, D_PAD]
            q_sq = jnp.sum(feats * feats, axis=-1, keepdims=True)  # [TQ, 1]

            # ---- L2 head: -sqrt(|q|^2 + |p|^2 - 2 q.p) -------------------
            cross = lax.dot_general(
                feats, proto_ref[...],
                dimension_numbers=(((1,), (1,)), ((), ())),
                preferred_element_type=jnp.float32)                # [TQ, C_PAD]
            d2 = jnp.maximum(q_sq + psq_ref[...] - 2.0 * cross, 0.0)
            l2 = -jnp.sqrt(d2)
            if use_softmax:
                # mask padded class lanes only when they would leak into the
                # softmax denominator; wrapper slices them off otherwise.
                col = lax.broadcasted_iota(jnp.int32, l2.shape, 1)
                l2 = jnp.where(col < n_classes, l2, -1e30)
                m = jnp.max(l2, axis=-1, keepdims=True)
                e = jnp.exp(l2 - m)
                l2 = e / jnp.sum(e, axis=-1, keepdims=True)        # exact norm
            l2_ref[...] = l2

            # ---- cosine head: normalize(q) @ normalize(p)^T --------------
            feats_n = feats * lax.rsqrt(jnp.maximum(q_sq, 1e-24))
            cos_ref[...] = lax.dot_general(
                feats_n, pn_ref[...],
                dimension_numbers=(((1,), (1,)), ((), ())),
                preferred_element_type=jnp.float32)                # [TQ, C_PAD]

    return kernel


# --------------------------------------------------------------------------
# Fused support kernel: backbone (K-reduction) + prototypes + cached tensors
# --------------------------------------------------------------------------
def _make_support_kernel(w_full, tk):
    def kernel(x_ref, w_ref, b_ref, lab_ref,
               sup_ref, proto_ref, pn_ref, psq_ref, acc_ref):
        k = pl.program_id(0)

        @pl.when(k == 0)
        def _():
            acc_ref[...] = jnp.zeros_like(acc_ref)

        if w_full:
            off = pl.multiple_of(k * tk, 128)
            w_blk = w_ref[pl.ds(off, tk), :]
        else:
            w_blk = w_ref[...]

        acc_ref[...] += lax.dot_general(
            x_ref[...], w_blk,
            dimension_numbers=(((1,), (0,)), ((), ())),
            preferred_element_type=jnp.float32)

        @pl.when(k == pl.num_programs(0) - 1)
        def _():
            feats = acc_ref[...] + b_ref[...]                      # [S_pad, D_PAD]
            sup_ref[...] = feats
            labels = lab_ref[...]                                  # [1, S_pad]
            # transposed one-hot built in-kernel: [C_PAD, S_pad]
            class_ids = lax.broadcasted_iota(
                jnp.int32, (C_PAD, labels.shape[1]), 0)
            onehot_t = (class_ids == labels).astype(jnp.float32)
            counts = jnp.sum(onehot_t, axis=1, keepdims=True)      # [C_PAD, 1]
            sums = lax.dot_general(
                onehot_t, feats,
                dimension_numbers=(((1,), (0,)), ((), ())),
                preferred_element_type=jnp.float32)                # [C_PAD, D_PAD]
            proto = sums / jnp.maximum(counts, 1.0)                # NaN guard
            proto_ref[...] = proto
            proto_sq = proto * proto
            # lane-dense per-class squared norms (1, C_PAD) via a tiny matmul
            # (avoids an in-kernel [C,1] -> [1,C] relayout / masked vst).
            psq_ref[...] = lax.dot_general(
                jnp.ones((1, proto.shape[1]), jnp.float32), proto_sq,
                dimension_numbers=(((1,), (1,)), ((), ())),
                preferred_element_type=jnp.float32)                # [1, C_PAD]
            row_sq = jnp.sum(proto_sq, axis=1, keepdims=True)      # [C_PAD, 1]
            pn_ref[...] = proto * lax.rsqrt(jnp.maximum(row_sq, 1e-24))

    return kernel


# --------------------------------------------------------------------------
# "Module": deterministic params + the prototypical forward pass
# --------------------------------------------------------------------------
class ComparativeModelPallas:
    def __init__(self, in_pixels, feature_dimension, use_softmax, key):
        kw, kb = jax.random.split(key)
        self.in_pixels = in_pixels
        self.feature_dimension = feature_dimension
        self.use_softmax = use_softmax
        self.p_pad = _round_up(in_pixels, LANE)
        self.d_pad = _round_up(feature_dimension, LANE)
        self.tk = _pick_k_tile(self.p_pad)
        # Keep W resident in VMEM (constant index_map) when it comfortably fits.
        self.w_resident = (self.p_pad * self.d_pad * 2) <= W_RESIDENT_BYTES

        # deterministic synthetic backbone parameters (flatten + linear).
        # Weights zero-padded along BOTH the pixel axis and the feature axis
        # (D_PAD multiple of 128) and stored bf16 for the MXU; bias stays f32.
        w_f32 = (jax.random.normal(kw, (in_pixels, feature_dimension),
                                   jnp.float32) * (1.0 / jnp.sqrt(in_pixels)))
        self.w = jnp.pad(
            w_f32, ((0, self.p_pad - in_pixels),
                    (0, self.d_pad - feature_dimension))).astype(jnp.bfloat16)
        b_f32 = jax.random.normal(kb, (1, feature_dimension), jnp.float32) * 0.01
        self.b = jnp.pad(b_f32, ((0, 0), (0, self.d_pad - feature_dimension)))

        self.n_classes = None
        self.prototypes = None
        self.support_features = None
        self.support_labels = None
        self._proto_pad = None
        self._proto_norm_pad = None
        self._psq_row = None
        # TODO(synk): backbone_one/backbone_two are injected abstract
        # nn.Modules in the original; a deterministic linear stand-in is used.

    # -- helpers ------------------------------------------------------------
    def _prep_rows(self, images, row_pad):
        n = images.shape[0]
        x = images.reshape(n, -1).astype(jnp.bfloat16)
        n_pad = _round_up(n, row_pad)
        x = jnp.pad(x, ((0, n_pad - n), (0, self.p_pad - x.shape[1])))
        return x, n, n_pad

    def _w_spec(self, n_grid_axes):
        if self.w_resident:
            shape = (self.p_pad, self.d_pad)
            if n_grid_axes == 1:
                return pl.BlockSpec(shape, lambda k: (0, 0))
            return pl.BlockSpec(shape, lambda i, k: (0, 0))
        shape = (self.tk, self.d_pad)
        if n_grid_axes == 1:
            return pl.BlockSpec(shape, lambda k: (k, 0))
        return pl.BlockSpec(shape, lambda i, k: (k, 0))

    def _w_bytes(self):
        if self.w_resident:
            return self.p_pad * self.d_pad * 2
        return self.tk * self.d_pad * 2

    # -- support path (fused backbone + prototypes, run once per episode) ---
    def process_support_set(self, support_images, support_labels, n_classes):
        self.n_classes = int(n_classes)
        self.support_labels = support_labels
        d_pad = self.d_pad
        x, s, s_pad = self._prep_rows(support_images, SUP_ROW_PAD)
        labels_p = jnp.full((1, s_pad), -1, jnp.int32)
        labels_p = labels_p.at[0, :s].set(support_labels.astype(jnp.int32))

        tk = self.tk
        k_tiles = self.p_pad // tk
        kernel = _make_support_kernel(self.w_resident, tk)

        est = 2 * (self._w_bytes() + s_pad * tk * 2
                   + 2 * C_PAD * d_pad * 4 + s_pad * d_pad * 4
                   + C_PAD * 4 + d_pad * 4) + s_pad * d_pad * 4

        sup, proto, proto_n, psq = pl.pallas_call(
            kernel,
            out_shape=(
                jax.ShapeDtypeStruct((s_pad, d_pad), jnp.float32),
                jax.ShapeDtypeStruct((C_PAD, d_pad), jnp.float32),
                jax.ShapeDtypeStruct((C_PAD, d_pad), jnp.float32),
                jax.ShapeDtypeStruct((1, C_PAD), jnp.float32),
            ),
            grid_spec=pltpu.PrefetchScalarGridSpec(
                num_scalar_prefetch=0,
                grid=(k_tiles,),
                in_specs=[
                    pl.BlockSpec((s_pad, tk), lambda k: (0, k)),
                    self._w_spec(n_grid_axes=1),
                    pl.BlockSpec((1, d_pad), lambda k: (0, 0)),
                    pl.BlockSpec((1, s_pad), lambda k: (0, 0)),
                ],
                out_specs=[
                    pl.BlockSpec((s_pad, d_pad), lambda k: (0, 0)),
                    pl.BlockSpec((C_PAD, d_pad), lambda k: (0, 0)),
                    pl.BlockSpec((C_PAD, d_pad), lambda k: (0, 0)),
                    pl.BlockSpec((1, C_PAD), lambda k: (0, 0)),
                ],
                scratch_shapes=[pltpu.VMEM((s_pad, d_pad), jnp.float32)],
            ),
            compiler_params=pltpu.CompilerParams(
                dimension_semantics=("arbitrary",),
                vmem_limit_bytes=_vmem_limit(est)),
        )(x, self.w, self.b, labels_p)

        self.support_features = sup[:s, :self.feature_dimension]
        self._proto_pad = proto                                    # [C_PAD, D_PAD]
        self._proto_norm_pad = proto_n                             # [C_PAD, D_PAD]
        self._psq_row = psq                                        # [1, C_PAD]
        self.prototypes = proto[:n_classes, :self.feature_dimension]

    # -- query path: ONE fused pallas_call producing both heads --------------
    def forward_both(self, query_images):
        d_pad = self.d_pad
        x, q, q_pad = self._prep_rows(query_images, TQ)
        if q_pad // TQ < 2:
            # guarantee >= 2 tiles on the "parallel" axis (v7x dual TC)
            x = jnp.pad(x, ((0, 2 * TQ - q_pad), (0, 0)))
            q_pad = 2 * TQ

        tk = self.tk
        k_tiles = self.p_pad // tk
        grid = (q_pad // TQ, k_tiles)
        kernel = _make_forward_kernel(
            self.n_classes, self.use_softmax, self.w_resident, tk)

        est = 2 * (self._w_bytes() + TQ * tk * 2
                   + 2 * TQ * C_PAD * 4
                   + 2 * C_PAD * d_pad * 4 + C_PAD * 4 + d_pad * 4) \
            + TQ * d_pad * 4

        # TODO(synk): on v7x with very small D, pipeline_mode=pl.Buffered(3)
        # on the x BlockSpec can hide residual DMA startup; left at default
        # double-buffering for lowering safety.
        l2, cos = pl.pallas_call(
            kernel,
            out_shape=(
                jax.ShapeDtypeStruct((q_pad, C_PAD), jnp.float32),
                jax.ShapeDtypeStruct((q_pad, C_PAD), jnp.float32),
            ),
            grid_spec=pltpu.PrefetchScalarGridSpec(
                num_scalar_prefetch=0,
                grid=grid,
                in_specs=[
                    pl.BlockSpec((TQ, tk), lambda i, k: (i, k)),
                    self._w_spec(n_grid_axes=2),
                    pl.BlockSpec((1, d_pad), lambda i, k: (0, 0)),
                    pl.BlockSpec((C_PAD, d_pad), lambda i, k: (0, 0)),
                    pl.BlockSpec((1, C_PAD), lambda i, k: (0, 0)),
                    pl.BlockSpec((C_PAD, d_pad), lambda i, k: (0, 0)),
                ],
                out_specs=[
                    pl.BlockSpec((TQ, C_PAD), lambda i, k: (i, 0)),
                    pl.BlockSpec((TQ, C_PAD), lambda i, k: (i, 0)),
                ],
                scratch_shapes=[pltpu.VMEM((TQ, d_pad), jnp.float32)],
            ),
            compiler_params=pltpu.CompilerParams(
                dimension_semantics=("parallel", "arbitrary"),
                vmem_limit_bytes=_vmem_limit(est)),
        )(x, self.w, self.b, self._proto_pad, self._psq_row,
          self._proto_norm_pad)

        nc = self.n_classes
        return l2[:q, :nc], cos[:q, :nc]

    def forward(self, query_images):
        return self.forward_both(query_images)[0]

    def forward_cosine(self, query_images):
        # TODO(synk): PyTorch base leaves softmax to the subclass; cosine head
        # is returned raw here (matches the reference implementation below).
        return self.forward_both(query_images)[1]


# --------------------------------------------------------------------------
# Pure-JAX reference (same bf16-rounded backbone inputs) for a sanity check
# --------------------------------------------------------------------------
def _reference(sup_imgs, sup_labels, qry_imgs, w_pad_bf16, b_pad, in_pixels,
               feat_dim, n_classes, use_softmax):
    hp = jax.lax.Precision.HIGHEST
    w = w_pad_bf16[:in_pixels, :feat_dim].astype(jnp.float32)
    b = b_pad[:, :feat_dim]

    def feats(x):
        xf = x.reshape(x.shape[0], -1).astype(jnp.bfloat16).astype(jnp.float32)
        return jnp.dot(xf, w, precision=hp) + b

    sf, qf = feats(sup_imgs), feats(qry_imgs)
    onehot = jax.nn.one_hot(sup_labels, n_classes, dtype=jnp.float32)
    counts = jnp.maximum(jnp.sum(onehot, axis=0)[:, None], 1.0)
    proto = jnp.dot(onehot.T, sf, precision=hp) / counts
    d2 = (jnp.sum(qf * qf, 1, keepdims=True)
          + jnp.sum(proto * proto, 1)[None, :]
          - 2.0 * jnp.dot(qf, proto.T, precision=hp))
    logits = -jnp.sqrt(jnp.maximum(d2, 0.0))
    if use_softmax:
        logits = jax.nn.softmax(logits, axis=-1)
    qn = qf / jnp.maximum(jnp.linalg.norm(qf, axis=1, keepdims=True), 1e-12)
    pn = proto / jnp.maximum(jnp.linalg.norm(proto, axis=1, keepdims=True),
                             1e-12)
    cos = jnp.dot(qn, pn.T, precision=hp)
    return logits, cos


if __name__ == "__main__":
    key = jax.random.PRNGKey(0)
    k_params, k_sup, k_qry = jax.random.split(key, 3)

    # small shapes: in_channels=1 (as in compute_backbone_output_shape), 16x16
    n_classes = 4
    n_support = 8
    n_query = 8
    c, h, w = 1, 16, 16
    feature_dim = 32

    support_images = jax.random.normal(k_sup, (n_support, c, h, w), jnp.float32)
    support_labels = jnp.array([0, 1, 2, 3, 0, 1, 2, 3], dtype=jnp.int32)
    query_images = jax.random.normal(k_qry, (n_query, c, h, w), jnp.float32)

    model = ComparativeModelPallas(
        in_pixels=c * h * w, feature_dimension=feature_dim,
        use_softmax=True, key=k_params)

    model.process_support_set(support_images, support_labels, n_classes)
    # single fused pallas_call producing both heads
    logits, cos = model.forward_both(query_images)

    jax.block_until_ready(logits)
    jax.block_until_ready(cos)

    assert logits.shape == (n_query, n_classes)
    assert cos.shape == (n_query, n_classes)
    assert bool(jnp.all(jnp.isfinite(logits)))
    assert bool(jnp.all(jnp.isfinite(cos)))
    # softmax rows must sum to ~1 (exact divide in-kernel -> tight tolerance)
    assert bool(jnp.allclose(jnp.sum(logits, axis=-1), 1.0, atol=1e-3))

    ref_logits, ref_cos = _reference(
        support_images, support_labels, query_images,
        model.w, model.b, c * h * w, feature_dim, n_classes, use_softmax=True)
    assert bool(jnp.allclose(logits, ref_logits, atol=5e-2))
    assert bool(jnp.allclose(cos, ref_cos, atol=5e-2))

    print("KERNEL_OK")
</pallas_src>

<mosaic_0001>
module attributes {stable_mosaic.version = 11 : i64} {
  func.func @kernel(%arg0: i32, %arg1: memref<16x256xbf16, #tpu.memory_space<vmem>>, %arg2: memref<256x128xbf16, #tpu.memory_space<vmem>>, %arg3: memref<1x128xf32, #tpu.memory_space<vmem>>, %arg4: memref<1x16xi32, #tpu.memory_space<vmem>>, %arg5: memref<16x128xf32, #tpu.memory_space<vmem>>, %arg6: memref<128x128xf32, #tpu.memory_space<vmem>>, %arg7: memref<128x128xf32, #tpu.memory_space<vmem>>, %arg8: memref<1x128xf32, #tpu.memory_space<vmem>>, %arg9: memref<16x128xf32, #tpu.memory_space<vmem>>) attributes {dimension_semantics = [#tpu.dimension_semantics<arbitrary>], iteration_bounds = array<i64: 1>, scalar_prefetch = 0 : i64, scratch_operands = 1 : i64, tpu.core_type = #tpu.core_type<tc>, window_params = [{transform_indices = @transform_0, window_bounds = array<i64: 16, 256>}, {pipeline_mode = #tpu.pipeline_mode<synchronous>, transform_indices = @transform_1, window_bounds = array<i64: 256, 128>}, {pipeline_mode = #tpu.pipeline_mode<synchronous>, transform_indices = @transform_2, window_bounds = array<i64: 1, 128>}, {pipeline_mode = #tpu.pipeline_mode<synchronous>, transform_indices = @transform_3, window_bounds = array<i64: 1, 16>}, {pipeline_mode = #tpu.pipeline_mode<synchronous>, transform_indices = @transform_4, window_bounds = array<i64: 16, 128>}, {pipeline_mode = #tpu.pipeline_mode<synchronous>, transform_indices = @transform_5, window_bounds = array<i64: 128, 128>}, {pipeline_mode = #tpu.pipeline_mode<synchronous>, transform_indices = @transform_6, window_bounds = array<i64: 128, 128>}, {pipeline_mode = #tpu.pipeline_mode<synchronous>, transform_indices = @transform_7, window_bounds = array<i64: 1, 128>}]} {
    %c0_i32 = arith.constant 0 : i32
    %0 = arith.cmpi eq, %arg0, %c0_i32 : i32
    %1 = arith.extui %0 : i1 to i32
    %c0_i32_0 = arith.constant 0 : i32
    %2 = arith.cmpi ne, %1, %c0_i32_0 : i32
    scf.if %2 {
      %cst_9 = arith.constant 0.000000e+00 : f32
      %15 = vector.broadcast %cst_9 : f32 to vector<16x128xf32>
      %c0_10 = arith.constant 0 : index
      %c0_11 = arith.constant 0 : index
      %16 = vector.load %arg9[%c0_10, %c0_11] : memref<16x128xf32, #tpu.memory_space<vmem>>, vector<16x128xf32>
      tpu.vector_store %arg9[%c0_10, %c0_11], %15 {strides = array<i32>} : memref<16x128xf32, #tpu.memory_space<vmem>>, vector<16x128xf32>,
    } else {
    }
    %c256_i32 = arith.constant 256 : i32
    %3 = arith.muli %arg0, %c256_i32 : i32
    %4 = tpu.assume_multiple %3, 128 : i32
    %5 = arith.index_cast %4 : i32 to index
    %c0 = arith.constant 0 : index
    %6 = vector.load %arg2[%5, %c0] : memref<256x128xbf16, #tpu.memory_space<vmem>>, vector<256x128xbf16>
    %c0_1 = arith.constant 0 : index
    %c0_2 = arith.constant 0 : index
    %7 = vector.load %arg9[%c0_1, %c0_2] : memref<16x128xf32, #tpu.memory_space<vmem>>, vector<16x128xf32>
    %c0_3 = arith.constant 0 : index
    %c0_4 = arith.constant 0 : index
    %8 = vector.load %arg1[%c0_3, %c0_4] : memref<16x256xbf16, #tpu.memory_space<vmem>>, vector<16x256xbf16>
    %cst = arith.constant dense<0.000000e+00> : vector<16x128xf32>
    %9 = tpu.matmul %8, %6, %cst {dimension_numbers = #tpu.dot_dimension_numbers<[1], [0], [0], [1], [0, 0, 1, 1], [], []>} : vector<16x256xbf16>, vector<256x128xbf16>, vector<16x128xf32> -> vector<16x128xf32>
    %10 = arith.addf %7, %9 : vector<16x128xf32>
    %c0_5 = arith.constant 0 : index
    %c0_6 = arith.constant 0 : index
    %11 = vector.load %arg9[%c0_5, %c0_6] : memref<16x128xf32, #tpu.memory_space<vmem>>, vector<16x128xf32>
    tpu.vector_store %arg9[%c0_5, %c0_6], %10 {strides = array<i32>} : memref<16x128xf32, #tpu.memory_space<vmem>>, vector<16x128xf32>,
    %c0_i32_7 = arith.constant 0 : i32
    %12 = arith.cmpi eq, %arg0, %c0_i32_7 : i32
    %13 = arith.extui %12 : i1 to i32
    %c0_i32_8 = arith.constant 0 : i32
    %14 = arith.cmpi ne, %13, %c0_i32_8 : i32
    scf.if %14 {
      %c0_9 = arith.constant 0 : index
      %c0_10 = arith.constant 0 : index
      %15 = vector.load %arg9[%c0_9, %c0_10] : memref<16x128xf32, #tpu.memory_space<vmem>>, vector<16x128xf32>
      %c0_11 = arith.constant 0 : index
      %c0_12 = arith.constant 0 : index
      %16 = vector.load %arg3[%c0_11, %c0_12] : memref<1x128xf32, #tpu.memory_space<vmem>>, vector<1x128xf32>
      %17 = vector.broadcast %16 : vector<1x128xf32> to vector<16x128xf32>
      %18 = arith.addf %15, %17 : vector<16x128xf32>
      %c0_13 = arith.constant 0 : index
      %c0_14 = arith.constant 0 : index
      %19 = vector.load %arg5[%c0_13, %c0_14] : memref<16x128xf32, #tpu.memory_space<vmem>>, vector<16x128xf32>
      tpu.vector_store %arg5[%c0_13, %c0_14], %18 {strides = array<i32>} : memref<16x128xf32, #tpu.memory_space<vmem>>, vector<16x128xf32>,
      %c0_15 = arith.constant 0 : index
      %c0_16 = arith.constant 0 : index
      %20 = vector.load %arg4[%c0_15, %c0_16] : memref<1x16xi32, #tpu.memory_space<vmem>>, vector<1x16xi32>
      %21 = tpu.iota {dimensions = array<i32: 0>} : vector<128x16xi32>
      %22 = vector.broadcast %20 : vector<1x16xi32> to vector<128x16xi32>
      %23 = arith.cmpi eq, %21, %22 : vector<128x16xi32>
      %24 = arith.extui %23 : vector<128x16xi1> to vector<128x16xi32>
      %25 = arith.sitofp %24 : vector<128x16xi32> to vector<128x16xf32>
      %cst_17 = arith.constant dense<0.000000e+00> : vector<128xf32>
      %26 = vector.multi_reduction <add>, %25, %cst_17 [1] : vector<128x16xf32> to vector<128xf32>
      %27 = vector.shape_cast %26 : vector<128xf32> to vector<128x1xf32>
      %cst_18 = arith.constant dense<0.000000e+00> : vector<128x128xf32>
      %28 = tpu.matmul %25, %18, %cst_18 {dimension_numbers = #tpu.dot_dimension_numbers<[1], [0], [0], [1], [0, 0, 1, 1], [], []>} : vector<128x16xf32>, vector<16x128xf32>, vector<128x128xf32> -> vector<128x128xf32>
      %cst_19 = arith.constant 1.000000e+00 : f32
      %29 = vector.broadcast %cst_19 : f32 to vector<128x1xf32>
      %30 = arith.maximumf %27, %29 : vector<128x1xf32>
      %31 = vector.broadcast %30 : vector<128x1xf32> to vector<128x128xf32>
      %32 = arith.divf %28, %31 : vector<128x128xf32>
      %c0_20 = arith.constant 0 : index
      %c0_21 = arith.constant 0 : index
      %33 = vector.load %arg6[%c0_20, %c0_21] : memref<128x128xf32, #tpu.memory_space<vmem>>, vector<128x128xf32>
      tpu.vector_store %arg6[%c0_20, %c0_21], %32 {strides = array<i32>} : memref<128x128xf32, #tpu.memory_space<vmem>>, vector<128x128xf32>,
      %34 = arith.mulf %32, %32 : vector<128x128xf32>
      %cst_22 = arith.constant 1.000000e+00 : f32
      %35 = vector.broadcast %cst_22 : f32 to vector<1x128xf32>
      %cst_23 = arith.constant dense<0.000000e+00> : vector<1x128xf32>
      %36 = tpu.matmul %35, %34, %cst_23 {dimension_numbers = #tpu.dot_dimension_numbers<[1], [1], [0], [0], [0, 0, 1, 0], [], []>} : vector<1x128xf32>, vector<128x128xf32>, vector<1x128xf32> -> vector<1x128xf32>
      %c0_24 = arith.constant 0 : index
      %c0_25 = arith.constant 0 : index
      %37 = vector.load %arg8[%c0_24, %c0_25] : memref<1x128xf32, #tpu.memory_space<vmem>>, vector<1x128xf32>
      tpu.vector_store %arg8[%c0_24, %c0_25], %36 {strides = array<i32>} : memref<1x128xf32, #tpu.memory_space<vmem>>, vector<1x128xf32>,
      %cst_26 = arith.constant dense<0.000000e+00> : vector<128xf32>
      %38 = vector.multi_reduction <add>, %34, %cst_26 [1] : vector<128x128xf32> to vector<128xf32>
      %39 = vector.shape_cast %38 : vector<128xf32> to vector<128x1xf32>
      %cst_27 = arith.constant 1.000000e-24 : f32
      %40 = vector.broadcast %cst_27 : f32 to vector<128x1xf32>
      %41 = arith.maximumf %39, %40 : vector<128x1xf32>
      %42 = math.rsqrt %41 : vector<128x1xf32>
      %43 = vector.broadcast %42 : vector<128x1xf32> to vector<128x128xf32>
      %44 = arith.mulf %32, %43 : vector<128x128xf32>
      %c0_28 = arith.constant 0 : index
      %c0_29 = arith.constant 0 : index
      %45 = vector.load %arg7[%c0_28, %c0_29] : memref<128x128xf32, #tpu.memory_space<vmem>>, vector<128x128xf32>
      tpu.vector_store %arg7[%c0_28, %c0_29], %44 {strides = array<i32>} : memref<128x128xf32, #tpu.memory_space<vmem>>, vector<128x128xf32>,
    } else {
    }
    return
  }
  func.func @transform_0(%arg0: i32) -> (i32, i32) {
    %c0_i32 = arith.constant 0 : i32
    %c0_i32_0 = arith.constant 0 : i32
    return %c0_i32, %arg0 : i32, i32
  }
  func.func @transform_1(%arg0: i32) -> (i32, i32) {
    %c0_i32 = arith.constant 0 : i32
    %c0_i32_0 = arith.constant 0 : i32
    %c0_i32_1 = arith.constant 0 : i32
    return %c0_i32, %c0_i32_0 : i32, i32
  }
  func.func @transform_2(%arg0: i32) -> (i32, i32) {
    %c0_i32 = arith.constant 0 : i32
    %c0_i32_0 = arith.constant 0 : i32
    %c0_i32_1 = arith.constant 0 : i32
    return %c0_i32, %c0_i32_0 : i32, i32
  }
  func.func @transform_3(%arg0: i32) -> (i32, i32) {
    %c0_i32 = arith.constant 0 : i32
    %c0_i32_0 = arith.constant 0 : i32
    %c0_i32_1 = arith.constant 0 : i32
    return %c0_i32, %c0_i32_0 : i32, i32
  }
  func.func @transform_4(%arg0: i32) -> (i32, i32) {
    %c0_i32 = arith.constant 0 : i32
    %c0_i32_0 = arith.constant 0 : i32
    %c0_i32_1 = arith.constant 0 : i32
    return %c0_i32, %c0_i32_0 : i32, i32
  }
  func.func @transform_5(%arg0: i32) -> (i32, i32) {
    %c0_i32 = arith.constant 0 : i32
    %c0_i32_0 = arith.constant 0 : i32
    %c0_i32_1 = arith.constant 0 : i32
    return %c0_i32, %c0_i32_0 : i32, i32
  }
  func.func @transform_6(%arg0: i32) -> (i32, i32) {
    %c0_i32 = arith.constant 0 : i32
    %c0_i32_0 = arith.constant 0 : i32
    %c0_i32_1 = arith.constant 0 : i32
    return %c0_i32, %c0_i32_0 : i32, i32
  }
  func.func @transform_7(%arg0: i32) -> (i32, i32) {
    %c0_i32 = arith.constant 0 : i32
    %c0_i32_0 = arith.constant 0 : i32
    %c0_i32_1 = arith.constant 0 : i32
    return %c0_i32, %c0_i32_0 : i32, i32
  }
}

</mosaic_0001>

<bundles_post_ra>
// kernel: tpu_custom_call.1
= control target key start
LH: loop header
LB: loop body
LE: loop exit
PB: predicated region body
PF: predicated region fallthrough
CT: control target
= control target key end

     0   :  { %13 = vsyncpa [#allocation4], 0  ;;  %s1651_s0 = inlined_call_operand.hbm [shape: bf16[16,256], index: 0, kind: input, shape index: {}]   ;;  %s1652_s1 = inlined_call_operand.hbm [shape: bf16[256,128], index: 1, kind: input, shape index: {}]   ;;  %s1653_s2 = inlined_call_operand.vmem [shape: f32[1,128], index: 2, kind: input, shape index: {}]   ;;  %s1654_s3 = inlined_call_operand.vmem [shape: s32[1,16], index: 3, kind: input, shape index: {}]   ;;  %s1655_s4 = inlined_call_operand.hbm [shape: f32[16,128], index: 4, kind: output, shape index: {0}]   ;;  %s1656_s5 = inlined_call_operand.hbm [shape: f32[128,128], index: 5, kind: output, shape index: {1}]   ;;  %s1657_s6 = inlined_call_operand.hbm [shape: f32[128,128], index: 6, kind: output, shape index: {2}]   ;;  %s1658_s7 = inlined_call_operand.hbm [shape: f32[1,128], index: 7, kind: output, shape index: {3}]  }
   0x1   :  { %14 = vsyncpa [#allocation7], 0 }
   0x2   :  { %15 = vsyncpa [#allocation5], 0 }
   0x3   :  { %16 = vsyncpa [#allocation10], 0 }
   0x4   :  { %17 = vsyncpa [#allocation13], 0  ;;  %s1289_s24 = smov [#allocation3]  }
   0x5   :  { %s23_s25 = sshll.u32 %s1289_s24, 4  ;;  %s24_s25 = int_to_ptr.vmem [resolvable:$true] %s23_s25 }
   0x6   :  { %s1167_s26 = scalar_lea.vmem %s24_s25, 256  ;;  %p1172_p1 = scmp.lt.s32.totalorder %s24_s25, %s24_s25 }
   0x7   :  { %p1168_p0 = scmp.ne.s32.totalorder %s24_s25, %s1167_s26  ;;  %p1173_p2 = scmp.lt.s32.totalorder %s1167_s26, %s1167_s26 }
   0x9   :  { %p1174_p3 = por %p1173_p2, %p1172_p1 }
   0xb   :  { %p1175_p4 = pnand %p1174_p3, %p1168_p0 }
   0xd   :  { %1178 = shalt.err (!%p1175_p4)
}
   0xe   :  { %s1290_s27 = smov 128   ;;  %s1291_s28 = smov 8  }
   0xf   :  { %29 = dma.hbm_to_vmem [thread:$0]  %s1651_s0, 256, %s24_s25, [#allocation4], %s1290_s27, %s1290_s27, %s1291_s28  }
  0x10   :  { %s1292_s8 = smov [#allocation6]  }
  0x11   :  { %s35_s9 = sshll.u32 %s1292_s8, 4  ;;  %s36_s9 = int_to_ptr.vmem [resolvable:$true] %s35_s9 }
  0x12   :  { %s1187_s10 = scalar_lea.vmem %s36_s9, 2048  ;;  %p1192_p6 = scmp.lt.s32.totalorder %s36_s9, %s36_s9 }
  0x13   :  { %p1188_p5 = scmp.ne.s32.totalorder %s36_s9, %s1187_s10  ;;  %p1193_p7 = scmp.lt.s32.totalorder %s1187_s10, %s1187_s10 }
  0x15   :  { %p1194_p8 = por %p1193_p7, %p1192_p6 }
  0x17   :  { %p1195_p9 = pnand %p1194_p8, %p1188_p5 }
  0x19   :  { %1198 = shalt.err (!%p1195_p9)
}
  0x1a   :  { %s1293_s11 = smov 64   ;;  %s1294_s12 = smov 4  }
  0x1b   :  { %41 = dma.hbm_to_vmem [thread:$0]  %s1652_s1, 2048, %s36_s9, [#allocation7], %s1293_s11, %s1293_s11, %s1294_s12  }
  0x1c   :  { %1279 = dma.done.wait [#allocation4], 256  }
  0x1d   :  { %1280 = vsyncadd [#allocation4], 4294967040 }
  0x1e   :  { %1281 = dma.done.wait [#allocation7], 2048  }
  0x1f   :  { %1282 = vsyncadd [#allocation7], 4294965248  ;;  %v1076_v0 = vld [vmem:[#allocation6 + $0x78] sm:$0xff]   ;;  %v1078_v2 = vld [vmem:[#allocation6 + $0x70] sm:$0xff]   ;;  %v268_v18 = vlaneseq  ;;  %v1295_v21 = vmov 0.0   ;;  %vm337_vm1 = vcmask 130048  }
  0x20   :  { %v1077_v1 = vld [vmem:[#allocation6 + $0x38] sm:$0xff]   ;;  %943 = vmatprep.subr.bf16.mxu0 %v1076_v0  ;;  %v1079_v3 = vld [vmem:[#allocation6 + $0x30] sm:$0xff]   ;;  %v1080_v4 = vld [vmem:[#allocation6 + $0x68] sm:$0xff]   ;;  %s1299_s17 = smov [#allocation8]  }
  0x21   :  { %944 = vmatpush3.bf16.msra.mxu0 %v1077_v1  ;;  %v1081_v5 = vld [vmem:[#allocation6 + $0x28] sm:$0xff]   ;;  %v1082_v6 = vld [vmem:[#allocation6 + $0x60] sm:$0xff]   ;;  %v1084_v8 = vld [vmem:[#allocation6 + $0x58] sm:$0xff]   ;;  %v1351_v19 = vshrl.u32 %v268_v18, 7  ;;  %s831_s18 = sshll.u32 %s1299_s17, 4  ;;  %s832_s18 = int_to_ptr.vmem [resolvable:$true] %s831_s18 }
  0x22   :  { %945 = vmatprep.subr.bf16.mxu0 %v1078_v2  ;;  %v1083_v7 = vld [vmem:[#allocation6 + $0x20] sm:$0xff]   ;;  %v1085_v9 = vld [vmem:[#allocation6 + $0x18] sm:$0xff]   ;;  %v1086_v10 = vld [vmem:[#allocation6 + $0x50] sm:$0xff]  }
  0x23   :  { %v1094_v11 = vld [vmem:[#allocation3 + $0x4] ss:$8 sps:$4 sm:$0xff]   ;;  %v1088_v13 = vld [vmem:[#allocation6 + $0x48] sm:$0xff]   ;;  %v1090_v15 = vld [vmem:[#allocation6 + $0x40] sm:$0xff]   ;;  %v284_v23 = vadd.s32 120, %v1351_v19  ;;  %v282_v24 = vadd.s32 104, %v1351_v19 }
  0x24   :  { %v1087_v12 = vld [vmem:[#allocation6 + $0x10] sm:$0xff]   ;;  %238 = vmatprep.mubr.bf16.mxu0 %v1094_v11  ;;  %v1089_v14 = vld [vmem:[#allocation6 + $0x8] sm:$0xff]   ;;  %v1091_v16 = vld [vmem:[#allocation6] sm:$0xff]   ;;  %v283_v28 = vadd.s32 112, %v1351_v19  ;;  %v281_v30 = vadd.s32 96, %v1351_v19  ;;  %v278_v31 = vadd.s32 72, %v1351_v19 }
  0x25   :  { %946 = vmatpush3.bf16.msra.mxu0 %v1079_v3  ;;  %v1092_v17 = vld [vmem:[#allocation3] ss:$8 sps:$4 sm:$0xff]   ;;  %v280_v35 = vadd.s32 88, %v1351_v19  ;;  %v277_v36 = vadd.s32 64, %v1351_v19  ;;  %v279_v38 = vadd.s32 80, %v1351_v19  ;;  %v276_v39 = vadd.s32 56, %v1351_v19 }
  0x26   :  { %947 = vmatprep.subr.bf16.mxu0 %v1080_v4  ;;  %v1356_v20 = vld [vmem:[%s1654_s3] ss:$0 sm:$0xff]  ;;  %v275_v43 = vadd.s32 48, %v1351_v19  ;;  %v274_v46 = vadd.s32 40, %v1351_v19  ;;  %v273_v48 = vadd.s32 32, %v1351_v19  ;;  %v272_v52 = vadd.s32 24, %v1351_v19 }
  0x27   :  { %vm289_vm0 = vcmp.eq.s32.totalorder %v1351_v19, %v1356_v20  ;;  %vm304_vm2 = vcmp.eq.s32.totalorder %v284_v23, %v1356_v20  ;;  %vm302_vm3 = vcmp.eq.s32.totalorder %v282_v24, %v1356_v20  ;;  %vm303_vm4 = vcmp.eq.s32.totalorder %v283_v28, %v1356_v20 }
  0x28   :  { %v1361_v22 = vsel %vm289_vm0, 1.0, %v1295_v21  ;;  %v1369_v25 = vsel %vm304_vm2, 1.0, %v1295_v21  ;;  %v1375_v27 = vsel %vm302_vm3, 1.0, %v1295_v21  ;;  %v1384_v32 = vsel %vm303_vm4, 1.0, %v1295_v21 }
  0x29   :  { %948 = vmatpush3.bf16.msra.mxu0 %v1081_v5  ;;  %1004 = vmatprep.mubr.msk.f32.mxu1 %vm337_vm1, %v1361_v22  ;;  %v383_v26 = vsel %vm337_vm1, %v1369_v25, 0.0  ;;  %v377_v29 = vsel %vm337_vm1, %v1375_v27, 0.0  ;;  %vm301_vm5 = vcmp.eq.s32.totalorder %v281_v30, %v1356_v20  ;;  %v380_v33 = vsel %vm337_vm1, %v1384_v32, 0.0 }
  0x2a   :  { %949 = vmatprep.subr.bf16.mxu0 %v1082_v6  ;;  %384 = vadd.xlane.f32.xlu0 %v383_v26  ;;  %v1390_v34 = vsel %vm301_vm5, 1.0, %v1295_v21  ;;  %vm298_vm6 = vcmp.eq.s32.totalorder %v278_v31, %v1356_v20  ;;  %vm300_vm7 = vcmp.eq.s32.totalorder %v280_v35, %v1356_v20  ;;  %vm299_vm8 = vcmp.eq.s32.totalorder %v279_v38, %v1356_v20 }
  0x2b   :  { %378 = vadd.xlane.f32.xlu1 %v377_v29  ;;  %v374_v37 = vsel %vm337_vm1, %v1390_v34, 0.0  ;;  %v1401_v40 = vsel %vm300_vm7, 1.0, %v1295_v21  ;;  %v1407_v42 = vsel %vm299_vm8, 1.0, %v1295_v21  ;;  %vm297_vm9 = vcmp.eq.s32.totalorder %v277_v36, %v1356_v20 }
  0x2c   :  { %v371_v41 = vsel %vm337_vm1, %v1401_v40, 0.0  ;;  %v1412_v44 = vsel %vm298_vm6, 1.0, %v1295_v21  ;;  %v368_v45 = vsel %vm337_vm1, %v1407_v42, 0.0  ;;  %vm296_vm10 = vcmp.eq.s32.totalorder %v276_v39, %v1356_v20 }
  0x2d   :  { %950 = vmatpush3.bf16.msra.mxu0 %v1083_v7  ;;  %v365_v47 = vsel %vm337_vm1, %v1412_v44, 0.0  ;;  %v919_v49 = vsel %vm297_vm9, 1.0, %v1295_v21  ;;  %vm295_vm11 = vcmp.eq.s32.totalorder %v275_v43, %v1356_v20  ;;  %v918_v50 = vsel %vm296_vm10, 1.0, %v1295_v21  ;;  %v909_v7 = vld [vmem:[%s1653_s2] ss:$0 sm:$0xff]  ;;  %s1298_s2 = smov [#allocation9]  }
  0x2e   :  { %951 = vmatprep.subr.bf16.mxu0 %v1084_v8  ;;  %381 = vadd.xlane.f32.xlu0 %v380_v33  ;;  %v362_v51 = vsel %vm337_vm1, %v919_v49, 0.0  ;;  %vm294_vm12 = vcmp.eq.s32.totalorder %v274_v46, %v1356_v20  ;;  %v359_v53 = vsel %vm337_vm1, %v918_v50, 0.0  ;;  %v271_v54 = vadd.s32 16, %v1351_v19  ;;  %s843_s16 = sshll.u32 %s1298_s2, 4  ;;  %s844_s16 = int_to_ptr.vmem [resolvable:$true] %s843_s16 }
  0x2f   :  { %375 = vadd.xlane.f32.xlu1 %v374_v37  ;;  %vm293_vm13 = vcmp.eq.s32.totalorder %v273_v48, %v1356_v20  ;;  %v917_v55 = vsel %vm295_vm11, 1.0, %v1295_v21  ;;  %v916_v56 = vsel %vm294_vm12, 1.0, %v1295_v21  ;;  %v270_v58 = vadd.s32 8, %v1351_v19  ;;  %s1199_s19 = scalar_lea.vmem %s844_s16, 2048  ;;  %p1204_p11 = scmp.lt.s32.totalorder %s844_s16, %s844_s16 }
  0x30   :  { %v356_v57 = vsel %vm337_vm1, %v917_v55, 0.0  ;;  %vm292_vm14 = vcmp.eq.s32.totalorder %v272_v52, %v1356_v20  ;;  %v915_v59 = vsel %vm293_vm13, 1.0, %v1295_v21  ;;  %v353_v60 = vsel %vm337_vm1, %v916_v56, 0.0  ;;  %p1200_p10 = scmp.ne.s32.totalorder %s844_s16, %s1199_s19  ;;  %p1205_p12 = scmp.lt.s32.totalorder %s1199_s19, %s1199_s19 }
  0x31   :  { %952 = vmatpush3.bf16.msra.mxu0 %v1085_v9  ;;  %vm291_vm15 = vcmp.eq.s32.totalorder %v271_v54, %v1356_v20  ;;  %v350_v61 = vsel %vm337_vm1, %v915_v59, 0.0  ;;  %v914_v62 = vsel %vm292_vm14, 1.0, %v1295_v21  ;;  %vm290_vm0 = vcmp.eq.s32.totalorder %v270_v58, %v1356_v20 }
  0x32   :  { %953 = vmatprep.subr.bf16.mxu0 %v1086_v10  ;;  %372 = vadd.xlane.f32.xlu0 %v371_v41  ;;  %v913_v63 = vsel %vm291_vm15, 1.0, %v1295_v21  ;;  %v347_v0 = vsel %vm337_vm1, %v914_v62, 0.0  ;;  %v912_v2 = vsel %vm290_vm0, 1.0, %v1295_v21  ;;  %v338_v4 = vsel %vm337_vm1, %v1361_v22, 0.0  ;;  %p1206_p13 = por %p1205_p12, %p1204_p11 }
  0x33   :  { %369 = vadd.xlane.f32.xlu1 %v368_v45  ;;  %v344_v1 = vsel %vm337_vm1, %v913_v63, 0.0  ;;  %v341_v3 = vsel %vm337_vm1, %v912_v2, 0.0  ;;  %vm1296_vm2 = vmmov 0  }
  0x34   :  { %p1207_p0 = pnand %p1206_p13, %p1200_p10 }
  0x35   :  { %954 = vmatpush3.bf16.msra.mxu0 %v1087_v12 }
  0x36   :  { %955 = vmatprep.subr.bf16.mxu0 %v1088_v13  ;;  %366 = vadd.xlane.f32.xlu0 %v365_v47 }
  0x37   :  { %363 = vadd.xlane.f32.xlu1 %v362_v51 }
  0x39   :  { %956 = vmatpush3.bf16.msra.mxu0 %v1089_v14 }
  0x3a   :  { %957 = vmatprep.subr.bf16.mxu0 %v1090_v15  ;;  %360 = vadd.xlane.f32.xlu0 %v359_v53 }
  0x3b   :  { %357 = vadd.xlane.f32.xlu1 %v356_v57 }
  0x3d   :  { %958 = vmatpush3.bf16.msra.mxu0 %v1091_v16 }
  0x3e   :  { %354 = vadd.xlane.f32.xlu0 %v353_v60 }
  0x3f   :  { %351 = vadd.xlane.f32.xlu1 %v350_v61 }
  0x40   :  { %239 = vmatmul.mubr.bf16.vlgmr.msra.gmra.mxu0 %v1092_v17 }
  0x42   :  { %348 = vadd.xlane.f32.xlu0 %v347_v0 }
  0x43   :  { %345 = vadd.xlane.f32.xlu1 %v344_v1 }
  0x46   :  { %342 = vadd.xlane.f32.xlu0 %v341_v3 }
  0x47   :  { %339 = vadd.xlane.f32.xlu1 %v338_v4 }
  0xb3   :  { %v1474_v14 = vpop.xlane.xlu0 %384 }
  0xb4   :  { %v1476_v15 = vpop.xlane.xlu1 %378 }
  0xb5   :  { %v592_v53 = vmax.f32 %v1476_v15, 1.0 }
  0xb7   :  { %v1478_v16 = vpop.xlane.xlu0 %381 }
  0xb8   :  { %v1480_v17 = vpop.xlane.xlu1 %375  ;;  %v593_v4 = vmax.f32 %v1478_v16, 1.0 }
  0xb9   :  { %v591_v58 = vmax.f32 %v1480_v17, 1.0 }
  0xbb   :  { %v373_v18 = vpop.xlane.xlu0 %372 }
  0xbc   :  { %v370_v19 = vpop.xlane.xlu1 %369 }
  0xbd   :  { %v589_v48 = vmax.f32 %v370_v19, 1.0 }
  0xbf   :  { %v367_v20 = vpop.xlane.xlu0 %366 }
  0xc0   :  { %v364_v22 = vpop.xlane.xlu1 %363  ;;  %v588_v39 = vmax.f32 %v367_v20, 1.0 }
  0xc1   :  { %v587_v41 = vmax.f32 %v364_v22, 1.0 }
  0xc3   :  { %v361_v23 = vpop.xlane.xlu0 %360 }
  0xc4   :  { %v358_v24 = vpop.xlane.xlu1 %357  ;;  %v586_v37 = vmax.f32 %v361_v23, 1.0 }
  0xc5   :  { %v585_v38 = vmax.f32 %v358_v24, 1.0 }
  0xc7   :  { %v355_v26 = vpop.xlane.xlu0 %354 }
  0xc8   :  { %v584_v35 = vmax.f32 %v355_v26, 1.0 }
 0x100   :  { %v959_v5 = vpop.f32.mrf.mxu0 }
 0x102   :  { %v960_v6 = vpop.f32.mrf.mxu0 }
 0x103   :  { %v961_v8 = vadd.f32 %v960_v6, %v959_v5 }
 0x104   :  { %v962_v9 = vpop.f32.mrf.mxu0 }
 0x105   :  { %v263_v10 = vadd.f32 %v961_v8, %v909_v7 }
 0x106   :  { %v963_v11 = vpop.f32.mrf.mxu0 }
 0x107   :  { %265 = vst [vmem:[#allocation8] sm:$0xff] %v263_v10  ;;  %v964_v12 = vadd.f32 %v963_v11, %v962_v9 }
 0x109   :  { %v264_v13 = vadd.f32 %v964_v12, %v909_v7 }
 0x10b   :  { %266 = vst [vmem:[#allocation8 + $0x8] sm:$0xff] %v264_v13  ;;  %1000 = vmatprep.subr.mxu1 %v264_v13 }
 0x10c   :  { %1001 = vmatpush3.msra.mxu1 %v264_v13 }
 0x10d   :  { %1002 = vmatprep.subr.mxu1 %v263_v10 }
 0x10e   :  { %1003 = vmatpush3.msra.mxu1 %v263_v10 }
 0x10f   :  { %1005 = vmatmul.mubr.msk.f32.vlgmr.msra.gmra.mxu1 %vm337_vm1, %v912_v2  ;;  %1028 = vmatprep.subr.mxu1 %v1295_v21 }
 0x110   :  { %1007 = vmatprep.mubr.msk.f32.mxu1 %vm337_vm1, %v913_v63  ;;  %v594_v63 = vmax.f32 %v1474_v14, 1.0 }
 0x113   :  { %1008 = vmatmul.mubr.msk.f32.gmra.mxu1 %vm337_vm1, %v914_v62 }
 0x114   :  { %1010 = vmatprep.mubr.msk.f32.mxu1 %vm337_vm1, %v915_v59 }
 0x117   :  { %1011 = vmatmul.mubr.msk.f32.gmra.mxu1 %vm337_vm1, %v916_v56 }
 0x118   :  { %1013 = vmatprep.mubr.msk.f32.mxu1 %vm337_vm1, %v917_v55 }
 0x11b   :  { %1014 = vmatmul.mubr.msk.f32.gmra.mxu1 %vm337_vm1, %v918_v50 }
 0x11c   :  { %1016 = vmatprep.mubr.msk.f32.mxu1 %vm337_vm1, %v919_v49 }
 0x11f   :  { %1017 = vmatmul.mubr.msk.f32.gmra.mxu1 %vm337_vm1, %v1412_v44  ;;  %v590_v44 = vmax.f32 %v373_v18, 1.0 }
 0x120   :  { %1019 = vmatprep.mubr.msk.f32.mxu1 %vm337_vm1, %v1407_v42 }
 0x123   :  { %1020 = vmatmul.mubr.msk.f32.gmra.mxu1 %vm337_vm1, %v1401_v40 }
 0x124   :  { %1022 = vmatprep.mubr.msk.f32.mxu1 %vm337_vm1, %v1390_v34 }
 0x127   :  { %1023 = vmatmul.mubr.msk.f32.gmra.mxu1 %vm337_vm1, %v1375_v27  ;;  %v352_v27 = vpop.xlane.xlu1 %351 }
 0x128   :  { %1025 = vmatprep.mubr.msk.f32.mxu1 %vm337_vm1, %v1384_v32  ;;  %v583_v36 = vmax.f32 %v352_v27, 1.0 }
 0x12b   :  { %1026 = vmatmul.mubr.msk.f32.gmra.mxu1 %vm337_vm1, %v1369_v25  ;;  %v349_v25 = vpop.xlane.xlu0 %348  ;;  %v346_v28 = vpop.xlane.xlu1 %345 }
 0x12c   :  { %1060 = vmatprep.mubr.msk.f32.mxu1 %vm1296_vm2, %v1295_v21  ;;  %v582_v33 = vmax.f32 %v349_v25, 1.0  ;;  %v581_v34 = vmax.f32 %v346_v28, 1.0 }
 0x12f   :  { %v343_v29 = vpop.xlane.xlu0 %342  ;;  %v340_v30 = vpop.xlane.xlu1 %339 }
 0x130   :  { %v580_v31 = vmax.f32 %v343_v29, 1.0  ;;  %v579_v32 = vmax.f32 %v340_v30, 1.0 }
 0x132   :  { %1095 = vrcp.f32 %v580_v31 }
 0x133   :  { %1097 = vrcp.f32 %v579_v32 }
 0x134   :  { %1099 = vrcp.f32 %v582_v33 }
 0x135   :  { %1101 = vrcp.f32 %v581_v34 }
 0x136   :  { %1103 = vrcp.f32 %v584_v35 }
 0x137   :  { %1105 = vrcp.f32 %v583_v36 }
 0x138   :  { %1107 = vrcp.f32 %v586_v37 }
 0x139   :  { %1109 = vrcp.f32 %v585_v38 }
 0x13a   :  { %1111 = vrcp.f32 %v588_v39 }
 0x13b   :  { %1113 = vrcp.f32 %v587_v41 }
 0x13c   :  { %1115 = vrcp.f32 %v590_v44 }
 0x13d   :  { %1117 = vrcp.f32 %v589_v48 }
 0x13e   :  { %1119 = vrcp.f32 %v592_v53 }
 0x13f   :  { %v1096_v40 = vpop.eup %1095  ;;  %1121 = vrcp.f32 %v591_v58 }
 0x140   :  { %v1098_v42 = vpop.eup %1097  ;;  %1123 = vrcp.f32 %v594_v63 }
 0x141   :  { %v1100_v46 = vpop.eup %1099  ;;  %1125 = vrcp.f32 %v593_v4 }
 0x142   :  { %v1102_v51 = vpop.eup %1101 }
 0x143   :  { %v1104_v56 = vpop.eup %1103 }
 0x144   :  { %v1106_v61 = vpop.eup %1105 }
 0x145   :  { %v1108_v2 = vpop.eup %1107 }
 0x146   :  { %v1110_v7 = vpop.eup %1109 }
 0x147   :  { %v1112_v11 = vpop.eup %1111 }
 0x148   :  { %v1114_v15 = vpop.eup %1113 }
 0x149   :  { %v1116_v19 = vpop.eup %1115 }
 0x14a   :  { %v1118_v24 = vpop.eup %1117 }
 0x14b   :  { %v1120_v28 = vpop.eup %1119 }
 0x14c   :  { %v1122_v32 = vpop.eup %1121 }
 0x14d   :  { %v1124_v36 = vpop.eup %1123 }
 0x1cf   :  { %v1006_v43 = vpop.f32.mrf.mxu1 }
 0x1d0   :  { %v1483_v45 = vmul.f32 %v1096_v40, %v1006_v43  ;;  %v1126_v40 = vpop.eup %1125 }
 0x1d1   :  { %v500_v47 = vpop.f32.mrf.mxu1 }
 0x1d2   :  { %628 = vst [vmem:[#allocation9 + $0x8] sm:$0xff] %v1483_v45  ;;  %v1486_v49 = vmul.f32 %v1098_v42, %v500_v47  ;;  %v1490_v50 = vmul.f32 %v1483_v45, %v1483_v45 }
 0x1d3   :  { %v1009_v52 = vpop.f32.mrf.mxu1 }
 0x1d4   :  { %627 = vst [vmem:[#allocation9] sm:$0xff] %v1486_v49  ;;  %v1494_v54 = vmul.f32 %v1100_v46, %v1009_v52  ;;  %732 = vadd.xlane.f32.xlu1 %v1490_v50  ;;  %v1499_v55 = vmul.f32 %v1486_v49, %v1486_v49 }
 0x1d5   :  { %v510_v57 = vpop.f32.mrf.mxu1 }
 0x1d6   :  { %630 = vst [vmem:[#allocation9 + $0x18] sm:$0xff] %v1494_v54  ;;  %v1503_v59 = vmul.f32 %v1102_v51, %v510_v57  ;;  %730 = vadd.xlane.f32.xlu0 %v1499_v55  ;;  %v1508_v60 = vmul.f32 %v1494_v54, %v1494_v54  ;;  %v1297_v51 = vmov 1.0  }
 0x1d7   :  { %v1012_v62 = vpop.f32.mrf.mxu1 }
 0x1d8   :  { %629 = vst [vmem:[#allocation9 + $0x10] sm:$0xff] %v1503_v59  ;;  %v1512_v0 = vmul.f32 %v1104_v56, %v1012_v62  ;;  %736 = vadd.xlane.f32.xlu1 %v1508_v60  ;;  %v1517_v1 = vmul.f32 %v1503_v59, %v1503_v59 }
 0x1d9   :  { %v520_v3 = vpop.f32.mrf.mxu1 }
 0x1da   :  { %632 = vst [vmem:[#allocation9 + $0x28] sm:$0xff] %v1512_v0  ;;  %v1521_v5 = vmul.f32 %v1106_v61, %v520_v3  ;;  %734 = vadd.xlane.f32.xlu0 %v1517_v1  ;;  %v1526_v6 = vmul.f32 %v1512_v0, %v1512_v0 }
 0x1db   :  { %v1015_v8 = vpop.f32.mrf.mxu1 }
 0x1dc   :  { %631 = vst [vmem:[#allocation9 + $0x20] sm:$0xff] %v1521_v5  ;;  %v1529_v9 = vmul.f32 %v1108_v2, %v1015_v8  ;;  %740 = vadd.xlane.f32.xlu1 %v1526_v6  ;;  %v1534_v10 = vmul.f32 %v1521_v5, %v1521_v5 }
 0x1dd   :  { %v530_v12 = vpop.f32.mrf.mxu1 }
 0x1de   :  { %634 = vst [vmem:[#allocation9 + $0x38] sm:$0xff] %v1529_v9  ;;  %v1537_v13 = vmul.f32 %v1110_v7, %v530_v12  ;;  %738 = vadd.xlane.f32.xlu0 %v1534_v10  ;;  %v1542_v14 = vmul.f32 %v1529_v9, %v1529_v9 }
 0x1df   :  { %v1018_v16 = vpop.f32.mrf.mxu1 }
 0x1e0   :  { %633 = vst [vmem:[#allocation9 + $0x30] sm:$0xff] %v1537_v13  ;;  %v1545_v17 = vmul.f32 %v1112_v11, %v1018_v16  ;;  %744 = vadd.xlane.f32.xlu1 %v1542_v14  ;;  %v1550_v18 = vmul.f32 %v1537_v13, %v1537_v13 }
 0x1e1   :  { %v540_v20 = vpop.f32.mrf.mxu1 }
 0x1e2   :  { %636 = vst [vmem:[#allocation9 + $0x48] sm:$0xff] %v1545_v17  ;;  %v1553_v22 = vmul.f32 %v1114_v15, %v540_v20  ;;  %742 = vadd.xlane.f32.xlu0 %v1550_v18  ;;  %v652_v23 = vmul.f32 %v1545_v17, %v1545_v17 }
 0x1e3   :  { %v1021_v26 = vpop.f32.mrf.mxu1 }
 0x1e4   :  { %635 = vst [vmem:[#allocation9 + $0x40] sm:$0xff] %v1553_v22  ;;  %v1559_v27 = vmul.f32 %v1116_v19, %v1021_v26  ;;  %748 = vadd.xlane.f32.xlu1 %v652_v23  ;;  %v651_v25 = vmul.f32 %v1553_v22, %v1553_v22 }
 0x1e5   :  { %v550_v29 = vpop.f32.mrf.mxu1 }
 0x1e6   :  { %638 = vst [vmem:[#allocation9 + $0x58] sm:$0xff] %v1559_v27  ;;  %v1564_v30 = vmul.f32 %v1118_v24, %v550_v29  ;;  %746 = vadd.xlane.f32.xlu0 %v651_v25  ;;  %v654_v31 = vmul.f32 %v1559_v27, %v1559_v27 }
 0x1e7   :  { %v1024_v33 = vpop.f32.mrf.mxu1 }
 0x1e8   :  { %637 = vst [vmem:[#allocation9 + $0x50] sm:$0xff] %v1564_v30  ;;  %v1569_v34 = vmul.f32 %v1120_v28, %v1024_v33  ;;  %752 = vadd.xlane.f32.xlu1 %v654_v31  ;;  %v653_v35 = vmul.f32 %v1564_v30, %v1564_v30 }
 0x1e9   :  { %v560_v37 = vpop.f32.mrf.mxu1 }
 0x1ea   :  { %640 = vst [vmem:[#allocation9 + $0x68] sm:$0xff] %v1569_v34  ;;  %v1574_v38 = vmul.f32 %v1122_v32, %v560_v37  ;;  %750 = vadd.xlane.f32.xlu0 %v653_v35  ;;  %v656_v39 = vmul.f32 %v1569_v34, %v1569_v34 }
 0x1eb   :  { %v1027_v41 = vpop.f32.mrf.mxu1 }
 0x1ec   :  { %639 = vst [vmem:[#allocation9 + $0x60] sm:$0xff] %v1574_v38  ;;  %v1579_v42 = vmul.f32 %v1124_v36, %v1027_v41  ;;  %756 = vadd.xlane.f32.xlu1 %v656_v39  ;;  %v655_v43 = vmul.f32 %v1574_v38, %v1574_v38 }
 0x1ed   :  { %v570_v44 = vpop.f32.mrf.mxu1 }
 0x1ee   :  { %642 = vst [vmem:[#allocation9 + $0x78] sm:$0xff] %v1579_v42  ;;  %v1584_v46 = vmul.f32 %v1126_v40, %v570_v44  ;;  %754 = vadd.xlane.f32.xlu0 %v655_v43  ;;  %v658_v47 = vmul.f32 %v1579_v42, %v1579_v42 }
 0x1f0   :  { %641 = vst [vmem:[#allocation9 + $0x70] sm:$0xff] %v1584_v46  ;;  %760 = vadd.xlane.f32.xlu1 %v658_v47  ;;  %1029 = vmatpush3.xpose.msra.mxu1 %v658_v47  ;;  %v657_v48 = vmul.f32 %v1584_v46, %v1584_v46 }
 0x1f1   :  { %1030 = vmatprep.subr.mxu1 %v1295_v21 }
 0x1f2   :  { %758 = vadd.xlane.f32.xlu0 %v657_v48 }
 0x1f4   :  { %1031 = vmatpush3.xpose.msra.mxu1 %v657_v48 }
 0x1f5   :  { %1032 = vmatprep.subr.mxu1 %v1295_v21 }
 0x1f8   :  { %1033 = vmatpush3.xpose.msra.mxu1 %v656_v39 }
 0x1f9   :  { %1034 = vmatprep.subr.mxu1 %v1295_v21 }
 0x1fc   :  { %1035 = vmatpush3.xpose.msra.mxu1 %v655_v43 }
 0x1fd   :  { %1036 = vmatprep.subr.mxu1 %v1295_v21 }
 0x200   :  { %1037 = vmatpush3.xpose.msra.mxu1 %v654_v31 }
 0x201   :  { %1038 = vmatprep.subr.mxu1 %v1295_v21 }
 0x204   :  { %1039 = vmatpush3.xpose.msra.mxu1 %v653_v35 }
 0x205   :  { %1040 = vmatprep.subr.mxu1 %v1295_v21 }
 0x208   :  { %1041 = vmatpush3.xpose.msra.mxu1 %v652_v23 }
 0x209   :  { %1042 = vmatprep.subr.mxu1 %v1295_v21 }
 0x20c   :  { %1043 = vmatpush3.xpose.msra.mxu1 %v651_v25 }
 0x20d   :  { %1044 = vmatprep.subr.mxu1 %v1295_v21 }
 0x210   :  { %1045 = vmatpush3.xpose.msra.mxu1 %v1542_v14 }
 0x211   :  { %1046 = vmatprep.subr.mxu1 %v1295_v21 }
 0x214   :  { %1047 = vmatpush3.xpose.msra.mxu1 %v1550_v18 }
 0x215   :  { %1048 = vmatprep.subr.mxu1 %v1295_v21 }
 0x218   :  { %1049 = vmatpush3.xpose.msra.mxu1 %v1526_v6 }
 0x219   :  { %1050 = vmatprep.subr.mxu1 %v1295_v21 }
 0x21c   :  { %1051 = vmatpush3.xpose.msra.mxu1 %v1534_v10 }
 0x21d   :  { %1052 = vmatprep.subr.mxu1 %v1295_v21 }
 0x220   :  { %1053 = vmatpush3.xpose.msra.mxu1 %v1508_v60 }
 0x221   :  { %1054 = vmatprep.subr.mxu1 %v1295_v21 }
 0x224   :  { %1055 = vmatpush3.xpose.msra.mxu1 %v1517_v1 }
 0x225   :  { %1056 = vmatprep.subr.mxu1 %v1295_v21 }
 0x228   :  { %1057 = vmatpush3.xpose.msra.mxu1 %v1490_v50 }
 0x229   :  { %1058 = vmatprep.subr.mxu1 %v1295_v21 }
 0x22c   :  { %1059 = vmatpush3.xpose.msra.mxu1 %v1499_v55 }
 0x22f   :  { %1061 = vmatmul.mubr.f32.vlgmr.msra.gmra.mxu1 %v1297_v51 }
 0x25d   :  { %v733_v52 = vpop.xlane.xlu1 %732 }
 0x25e   :  { %v763_v53 = vmax.f32 %v733_v52, 1e-24 }
 0x25f   :  { %v731_v56 = vpop.xlane.xlu0 %730 }
 0x260   :  { %1127 = vrsqrt.f32 %v763_v53  ;;  %v762_v57 = vmax.f32 %v731_v56, 1e-24 }
 0x261   :  { %v737_v58 = vpop.xlane.xlu1 %736 }
 0x262   :  { %1129 = vrsqrt.f32 %v762_v57  ;;  %v765_v60 = vmax.f32 %v737_v58, 1e-24 }
 0x263   :  { %v735_v61 = vpop.xlane.xlu0 %734 }
 0x264   :  { %1131 = vrsqrt.f32 %v765_v60  ;;  %v764_v62 = vmax.f32 %v735_v61, 1e-24 }
 0x265   :  { %v741_v63 = vpop.xlane.xlu1 %740 }
 0x266   :  { %1133 = vrsqrt.f32 %v764_v62  ;;  %v767_v50 = vmax.f32 %v741_v63, 1e-24 }
 0x267   :  { %v739_v1 = vpop.xlane.xlu0 %738 }
 0x268   :  { %1135 = vrsqrt.f32 %v767_v50  ;;  %v766_v21 = vmax.f32 %v739_v1, 1e-24 }
 0x269   :  { %v745_v55 = vpop.xlane.xlu1 %744 }
 0x26a   :  { %1137 = vrsqrt.f32 %v766_v21  ;;  %v769_v2 = vmax.f32 %v745_v55, 1e-24 }
 0x26b   :  { %v743_v3 = vpop.xlane.xlu0 %742 }
 0x26c   :  { %1139 = vrsqrt.f32 %v769_v2  ;;  %v768_v4 = vmax.f32 %v743_v3, 1e-24 }
 0x26d   :  { %v1128_v6 = vpop.eup %1127  ;;  %v749_v7 = vpop.xlane.xlu1 %748 }
 0x26e   :  { %v795_v8 = vmul.f32 %v1128_v6, %v1483_v45  ;;  %1141 = vrsqrt.f32 %v768_v4  ;;  %v771_v10 = vmax.f32 %v749_v7, 1e-24 }
 0x26f   :  { %v1130_v11 = vpop.eup %1129  ;;  %v747_v12 = vpop.xlane.xlu0 %746 }
 0x270   :  { %811 = vst [vmem:[#allocation11 + $0x8] sm:$0xff] %v795_v8  ;;  %v794_v14 = vmul.f32 %v1130_v11, %v1486_v49  ;;  %1143 = vrsqrt.f32 %v771_v10  ;;  %v770_v15 = vmax.f32 %v747_v12, 1e-24 }
 0x271   :  { %1210 = shalt.err (!%p1207_p0)
}
 0x272   :  { %849 = dma.vmem_to_hbm [thread:$0]  %s844_s16, 2048, %s1656_s5, [#allocation10], %s1290_s27, %s1290_s27, %s1291_s28   ;;  %v1132_v45 = vpop.eup %1131  ;;  %v753_v16 = vpop.xlane.xlu1 %752  ;;  %810 = vst [vmem:[#allocation11] sm:$0xff] %v794_v14  ;;  %1145 = vrsqrt.f32 %v770_v15 }
 0x273   :  { %v797_v49 = vmul.f32 %v1132_v45, %v1494_v54  ;;  %v773_v18 = vmax.f32 %v753_v16, 1e-24  ;;  %s1219_s22 = scalar_lea.vmem %s832_s18, 256  ;;  %p1224_p2 = scmp.lt.s32.totalorder %s832_s18, %s832_s18 }
 0x274   :  { %p1220_p1 = scmp.ne.s32.totalorder %s832_s18, %s1219_s22  ;;  %p1225_p3 = scmp.lt.s32.totalorder %s1219_s22, %s1219_s22 }
 0x276   :  { %p1226_p4 = por %p1225_p3, %p1224_p2 }
 0x278   :  { %p1227_p5 = pnand %p1226_p4, %p1220_p1 }
 0x27a   :  { %1230 = shalt.err (!%p1227_p5)
}
 0x27b   :  { %837 = dma.vmem_to_hbm [thread:$0]  %s832_s18, 256, %s1655_s4, [#allocation5], %s1290_s27, %s1290_s27, %s1291_s28   ;;  %v1134_v19 = vpop.eup %1133  ;;  %v751_v20 = vpop.xlane.xlu0 %750  ;;  %813 = vst [vmem:[#allocation11 + $0x18] sm:$0xff] %v797_v49  ;;  %1147 = vrsqrt.f32 %v773_v18 }
 0x27c   :  { %v796_v54 = vmul.f32 %v1134_v19, %v1503_v59  ;;  %v772_v23 = vmax.f32 %v751_v20, 1e-24  ;;  %v1136_v24 = vpop.eup %1135  ;;  %v757_v26 = vpop.xlane.xlu1 %756  ;;  %s1300_s4 = smov [#allocation11]  }
 0x27d   :  { %v799_v25 = vmul.f32 %v1136_v24, %v1512_v0  ;;  %v775_v28 = vmax.f32 %v757_v26, 1e-24  ;;  %v1138_v29 = vpop.eup %1137  ;;  %s855_s24 = sshll.u32 %s1300_s4, 4  ;;  %s856_s24 = int_to_ptr.vmem [resolvable:$true] %s855_s24 }
 0x27e   :  { %812 = vst [vmem:[#allocation11 + $0x10] sm:$0xff] %v796_v54  ;;  %1149 = vrsqrt.f32 %v772_v23  ;;  %v798_v32 = vmul.f32 %v1138_v29, %v1521_v5  ;;  %v1140_v35 = vpop.eup %1139  ;;  %s1239_s25 = scalar_lea.vmem %s856_s24, 2048  ;;  %p1244_p7 = scmp.lt.s32.totalorder %s856_s24, %s856_s24 }
 0x27f   :  { %v755_v31 = vpop.xlane.xlu0 %754  ;;  %815 = vst [vmem:[#allocation11 + $0x28] sm:$0xff] %v799_v25  ;;  %1151 = vrsqrt.f32 %v775_v28  ;;  %v801_v59 = vmul.f32 %v1140_v35, %v1529_v9  ;;  %v1142_v39 = vpop.eup %1141  ;;  %p1240_p6 = scmp.ne.s32.totalorder %s856_s24, %s1239_s25  ;;  %p1245_p8 = scmp.lt.s32.totalorder %s1239_s25, %s1239_s25 }
 0x280   :  { %v774_v33 = vmax.f32 %v755_v31, 1e-24  ;;  %v761_v36 = vpop.xlane.xlu1 %760  ;;  %814 = vst [vmem:[#allocation11 + $0x20] sm:$0xff] %v798_v32  ;;  %v800_v0 = vmul.f32 %v1142_v39, %v1537_v13  ;;  %v1144_v43 = vpop.eup %1143 }
 0x281   :  { %v777_v37 = vmax.f32 %v761_v36, 1e-24  ;;  %817 = vst [vmem:[#allocation11 + $0x38] sm:$0xff] %v801_v59  ;;  %v803_v5 = vmul.f32 %v1144_v43, %v1545_v17  ;;  %v1146_v44 = vpop.eup %1145  ;;  %p1246_p9 = por %p1245_p8, %p1244_p7 }
 0x282   :  { %1153 = vrsqrt.f32 %v774_v33  ;;  %816 = vst [vmem:[#allocation11 + $0x30] sm:$0xff] %v800_v0  ;;  %v802_v47 = vmul.f32 %v1146_v44, %v1553_v22 }
 0x283   :  { %v759_v40 = vpop.xlane.xlu0 %758  ;;  %1155 = vrsqrt.f32 %v777_v37  ;;  %819 = vst [vmem:[#allocation11 + $0x48] sm:$0xff] %v803_v5  ;;  %p1247_p10 = pnand %p1246_p9, %p1240_p6 }
 0x284   :  { %v776_v41 = vmax.f32 %v759_v40, 1e-24  ;;  %818 = vst [vmem:[#allocation11 + $0x40] sm:$0xff] %v802_v47 }
 0x286   :  { %1157 = vrsqrt.f32 %v776_v41 }
 0x288   :  { %v1148_v48 = vpop.eup %1147 }
 0x289   :  { %v805_v9 = vmul.f32 %v1148_v48, %v1559_v27 }
 0x28b   :  { %v1150_v51 = vpop.eup %1149  ;;  %821 = vst [vmem:[#allocation11 + $0x58] sm:$0xff] %v805_v9 }
 0x28c   :  { %v804_v52 = vmul.f32 %v1150_v51, %v1564_v30  ;;  %v1152_v13 = vpop.eup %1151 }
 0x28d   :  { %v807_v53 = vmul.f32 %v1152_v13, %v1569_v34 }
 0x28e   :  { %820 = vst [vmem:[#allocation11 + $0x50] sm:$0xff] %v804_v52 }
 0x28f   :  { %v1154_v56 = vpop.eup %1153  ;;  %823 = vst [vmem:[#allocation11 + $0x68] sm:$0xff] %v807_v53 }
 0x290   :  { %v806_v17 = vmul.f32 %v1154_v56, %v1574_v38  ;;  %v1156_v57 = vpop.eup %1155 }
 0x291   :  { %v809_v22 = vmul.f32 %v1156_v57, %v1579_v42 }
 0x292   :  { %822 = vst [vmem:[#allocation11 + $0x60] sm:$0xff] %v806_v17 }
 0x293   :  { %v1158_v58 = vpop.eup %1157  ;;  %825 = vst [vmem:[#allocation11 + $0x78] sm:$0xff] %v809_v22 }
 0x294   :  { %v808_v27 = vmul.f32 %v1158_v58, %v1584_v46 }
 0x296   :  { %824 = vst [vmem:[#allocation11 + $0x70] sm:$0xff] %v808_v27 }
 0x297   :  { %1250 = shalt.err (!%p1247_p10)
}
 0x298   :  { %861 = dma.vmem_to_hbm [thread:$0]  %s856_s24, 2048, %s1657_s6, [#allocation10], %s1290_s27, %s1290_s27, %s1291_s28  }
 0x299   :  { %s1301_s30 = smov [#allocation12]  }
 0x29a   :  { %s868_s8 = sshll.u32 %s1301_s30, 4  ;;  %s869_s8 = int_to_ptr.vmem [resolvable:$true] %s868_s8 }
 0x29b   :  { %s1259_s9 = scalar_lea.vmem %s869_s8, 16  ;;  %s1263_s10 = scalar_lea.vmem %s869_s8, 32 }
 0x29c   :  { %p1260_p11 = scmp.ne.s32.totalorder %s869_s8, %s1259_s9  ;;  %p1264_p12 = scmp.lt.s32.totalorder %s869_s8, %s869_s8 }
 0x29d   :  { %p1265_p13 = scmp.lt.s32.totalorder %s1263_s10, %s1259_s9 }
 0x29f   :  { %p1266_p0 = por %p1265_p13, %p1264_p12 }
 0x2a1   :  { %p1267_p1 = pnand %p1266_p0, %p1260_p11 }
 0x2ef   :  { %v725_v30 = vpop.f32.mrf.mxu1 }
 0x2f0   :  { %729 = vst [vmem:[#allocation12] sm:$0x1] %v725_v30 }
 0x2f1   :  { %v1062_v34 = vpop.f32.mrf.mxu1 }
 0x2f2   :  { %1270 = shalt.err (!%p1267_p1)
}
 0x2f3   :  { %871 = dma.vmem_to_hbm [thread:$0]  %s869_s8, 16, %s1658_s7, [#allocation13]  }
 0x2f4   :  { %1283 = dma.done.wait [#allocation5], 256  }
 0x2f5   :  { %1284 = vsyncadd [#allocation5], 4294967040 }
 0x2f6   :  { %1285 = dma.done.wait [#allocation10], 4096  }
 0x2f7   :  { %1286 = vsyncadd [#allocation10], 4294963200 }
 0x2f8   :  { %1287 = dma.done.wait [#allocation13], 16  }
 0x2f9   :  { %1288 = vsyncadd [#allocation13], 4294967280 }
 0x2fa   :  { %884 = vsyncpa [#allocation4], 1 }
 0x2fb   :  { %885 = vsyncpa [#allocation7], 1 }
 0x2fc   :  { %886 = vsyncpa [#allocation5], 1 }
 0x2fd   :  { %887 = vsyncpa [#allocation10], 1 }
 0x2fe   :  { %888 = vsyncpa [#allocation13], 1 }

</bundles_post_ra>
